<compile_context>
chip_gen: v6e
topology: v6e:2x2x1
jax: 0.10.0
libtpu: 0.0.40
codegen_flags: <defaults>
</compile_context>

<pallas_src>
import jax
import jax.numpy as jnp
from jax.experimental import pallas as pl
from jax.experimental.pallas import tpu as pltpu

HIDDEN = 30      # fixed by the module definition
LANE = 128       # TPU lane width
SUBLANE = 8      # TPU sublane count (f32)
TM_MAX = 4096    # batch-tile rows; sized against v7x 32 MiB scoped-VMEM default


def _round_up(n, m):
    return (n + m - 1) // m * m


def actor_kernel(x_ref, w1_ref, w2_ref, params_ref, o_ref):
    hp = w1_ref.shape[1]          # padded hidden width (128)
    ap = o_ref.shape[1]           # padded action width (>=128)

    params = params_ref[...]      # (8, W) f32: row0=b1, row1=b2, row2=bound
    b1 = params[0:1, :hp]
    b2 = params[1:2, :ap]
    bound = params[2:3, :ap]

    # fc1 + ReLU (bf16 MXU inputs, f32 accumulation / elementwise)
    h = jnp.dot(x_ref[...], w1_ref[...], preferred_element_type=jnp.float32)
    h = jnp.maximum(h + b1, 0.0)

    # out layer
    y = jnp.dot(h.astype(jnp.bfloat16), w2_ref[...],
                preferred_element_type=jnp.float32)
    y = y + b2

    # tanh squash + action-bound scaling (padded lanes have bound == 0)
    o_ref[...] = jnp.tanh(y) * bound


def actor_forward(x, fc1_w, fc1_b, out_w, out_b, action_bound):
    """Forward pass of Actor.

    x:        (B, state_dim) f32
    fc1_w:    (30, state_dim) f32     (PyTorch layout: out_features x in_features)
    fc1_b:    (30,) f32
    out_w:    (action_dim, 30) f32
    out_b:    (action_dim,) f32
    action_bound: scalar or (action_dim,) f32
    returns:  (B, action_dim) f32
    """
    B, S = x.shape
    A = out_w.shape[0]

    HP = _round_up(HIDDEN, LANE)          # 128
    AP = _round_up(A, LANE)               # >= 128, lane-dense output
    W = max(HP, AP)

    # --- layout plumbing in the wrapper (zero-padding + bf16 for MXU feeds) ---
    w1p = jnp.zeros((S, HP), jnp.bfloat16).at[:, :HIDDEN].set(
        fc1_w.T.astype(jnp.bfloat16))
    w2p = jnp.zeros((HP, AP), jnp.bfloat16).at[:HIDDEN, :A].set(
        out_w.T.astype(jnp.bfloat16))

    # Pack biases + bound into a single small f32 tile -> one DMA instead of 3.
    params = jnp.zeros((SUBLANE, W), jnp.float32)
    params = params.at[0, :HIDDEN].set(fc1_b.astype(jnp.float32))
    params = params.at[1, :A].set(out_b.astype(jnp.float32))
    params = params.at[2, :A].set(
        jnp.broadcast_to(jnp.asarray(action_bound, jnp.float32), (A,)))

    # Batch tiling: big parallel tiles for training-size batches, padded to a
    # multiple of the tile (padded rows are zeros and sliced off afterwards).
    tm = min(TM_MAX, _round_up(B, SUBLANE))
    Bp = _round_up(B, tm)
    xp = jnp.zeros((Bp, S), jnp.bfloat16).at[:B].set(x.astype(jnp.bfloat16))

    out = pl.pallas_call(
        actor_kernel,
        out_shape=jax.ShapeDtypeStruct((Bp, AP), jnp.float32),
        grid=(Bp // tm,),
        in_specs=[
            pl.BlockSpec((tm, S), lambda i: (i, 0)),          # x: streamed per tile
            pl.BlockSpec((S, HP), lambda i: (0, 0)),           # W1: resident
            pl.BlockSpec((HP, AP), lambda i: (0, 0)),          # W2: resident
            pl.BlockSpec((SUBLANE, W), lambda i: (0, 0)),      # packed b1/b2/bound
        ],
        out_specs=pl.BlockSpec((tm, AP), lambda i: (i, 0)),    # lane-dense output
        compiler_params=pltpu.CompilerParams(
            dimension_semantics=("parallel",)),                # megacore on v7x
    )(xp, w1p, w2p, params)

    return out[:B, :A]


def actor_reference(x, fc1_w, fc1_b, out_w, out_b, action_bound):
    """Pure f32 reference (exact PyTorch semantics)."""
    h = jnp.maximum(x @ fc1_w.T + fc1_b, 0.0)
    y = h @ out_w.T + out_b
    return jnp.tanh(y) * action_bound


def actor_reference_bf16path(x, fc1_w, fc1_b, out_w, out_b, action_bound):
    """Reference using the same bf16-MXU / f32-accumulate path as the kernel."""
    xb = x.astype(jnp.bfloat16)
    w1b = fc1_w.T.astype(jnp.bfloat16)
    w2b = out_w.T.astype(jnp.bfloat16)
    h = jnp.dot(xb, w1b, preferred_element_type=jnp.float32) + fc1_b
    h = jnp.maximum(h, 0.0)
    y = jnp.dot(h.astype(jnp.bfloat16), w2b,
                preferred_element_type=jnp.float32) + out_b
    return jnp.tanh(y) * action_bound


if __name__ == "__main__":
    key = jax.random.PRNGKey(0)
    B, state_dim, action_dim = 2, 16, 4
    action_bound_val = 2.0

    k_x, k_w1, k_b1, k_w2, k_b2 = jax.random.split(key, 5)

    x = jax.random.normal(k_x, (B, state_dim), dtype=jnp.float32)

    # fc1.weight ~ N(0, 0.3); PyTorch layout (out_features, in_features)
    fc1_w = (0.3 * jax.random.normal(k_w1, (HIDDEN, state_dim))).astype(jnp.float32)
    fc1_b = jax.random.uniform(
        k_b1, (HIDDEN,), minval=-1.0 / jnp.sqrt(state_dim),
        maxval=1.0 / jnp.sqrt(state_dim)).astype(jnp.float32)

    out_w = (0.3 * jax.random.normal(k_w2, (action_dim, HIDDEN))).astype(jnp.float32)
    out_b = jax.random.uniform(
        k_b2, (action_dim,), minval=-1.0 / jnp.sqrt(HIDDEN),
        maxval=1.0 / jnp.sqrt(HIDDEN)).astype(jnp.float32)

    action_bound = jnp.float32(action_bound_val)

    out = jax.block_until_ready(
        actor_forward(x, fc1_w, fc1_b, out_w, out_b, action_bound))
    assert out.shape == (B, action_dim)

    # Tight check: kernel matches an identical bf16-MXU / f32-accumulate path.
    ref_bf = actor_reference_bf16path(x, fc1_w, fc1_b, out_w, out_b, action_bound)
    assert jnp.allclose(out, ref_bf, atol=1e-3, rtol=1e-3), \
        "mismatch vs bf16-path reference"

    # Loose check: semantics match the pure-f32 PyTorch reference (bf16 MXU feeds).
    ref = actor_reference(x, fc1_w, fc1_b, out_w, out_b, action_bound)
    assert jnp.allclose(out, ref, atol=1e-1, rtol=1e-1), \
        "mismatch vs f32 reference"

    print("KERNEL_OK")
</pallas_src>

<mosaic_0001>
module attributes {stable_mosaic.version = 11 : i64} {
  func.func @actor_kernel(%arg0: i32, %arg1: memref<8x16xbf16, #tpu.memory_space<vmem>>, %arg2: memref<16x128xbf16, #tpu.memory_space<vmem>>, %arg3: memref<128x128xbf16, #tpu.memory_space<vmem>>, %arg4: memref<8x128xf32, #tpu.memory_space<vmem>>, %arg5: memref<8x128xf32, #tpu.memory_space<vmem>>) attributes {dimension_semantics = [#tpu.dimension_semantics<parallel>], iteration_bounds = array<i64: 1>, scalar_prefetch = 0 : i64, scratch_operands = 0 : i64, tpu.core_type = #tpu.core_type<tc>, window_params = [{transform_indices = @transform_0, window_bounds = array<i64: 8, 16>}, {pipeline_mode = #tpu.pipeline_mode<synchronous>, transform_indices = @transform_1, window_bounds = array<i64: 16, 128>}, {pipeline_mode = #tpu.pipeline_mode<synchronous>, transform_indices = @transform_2, window_bounds = array<i64: 128, 128>}, {pipeline_mode = #tpu.pipeline_mode<synchronous>, transform_indices = @transform_3, window_bounds = array<i64: 8, 128>}, {transform_indices = @transform_4, window_bounds = array<i64: 8, 128>}]} {
    %c0 = arith.constant 0 : index
    %c0_0 = arith.constant 0 : index
    %0 = vector.load %arg4[%c0, %c0_0] : memref<8x128xf32, #tpu.memory_space<vmem>>, vector<8x128xf32>
    %1 = vector.extract_strided_slice %0 {offsets = [0, 0], sizes = [1, 128], strides = [1, 1]} : vector<8x128xf32> to vector<1x128xf32>
    %2 = vector.extract_strided_slice %0 {offsets = [1, 0], sizes = [1, 128], strides = [1, 1]} : vector<8x128xf32> to vector<1x128xf32>
    %3 = vector.extract_strided_slice %0 {offsets = [2, 0], sizes = [1, 128], strides = [1, 1]} : vector<8x128xf32> to vector<1x128xf32>
    %c0_1 = arith.constant 0 : index
    %c0_2 = arith.constant 0 : index
    %4 = vector.load %arg1[%c0_1, %c0_2] : memref<8x16xbf16, #tpu.memory_space<vmem>>, vector<8x16xbf16>
    %c0_3 = arith.constant 0 : index
    %c0_4 = arith.constant 0 : index
    %5 = vector.load %arg2[%c0_3, %c0_4] : memref<16x128xbf16, #tpu.memory_space<vmem>>, vector<16x128xbf16>
    %cst = arith.constant dense<0.000000e+00> : vector<8x128xf32>
    %6 = tpu.matmul %4, %5, %cst {dimension_numbers = #tpu.dot_dimension_numbers<[1], [0], [0], [1], [0, 0, 1, 1], [], []>} : vector<8x16xbf16>, vector<16x128xbf16>, vector<8x128xf32> -> vector<8x128xf32>
    %7 = vector.broadcast %1 : vector<1x128xf32> to vector<8x128xf32>
    %8 = arith.addf %6, %7 : vector<8x128xf32>
    %cst_5 = arith.constant 0.000000e+00 : f32
    %9 = vector.broadcast %cst_5 : f32 to vector<8x128xf32>
    %10 = arith.maximumf %8, %9 : vector<8x128xf32>
    %11 = arith.truncf %10 : vector<8x128xf32> to vector<8x128xbf16>
    %c0_6 = arith.constant 0 : index
    %c0_7 = arith.constant 0 : index
    %12 = vector.load %arg3[%c0_6, %c0_7] : memref<128x128xbf16, #tpu.memory_space<vmem>>, vector<128x128xbf16>
    %cst_8 = arith.constant dense<0.000000e+00> : vector<8x128xf32>
    %13 = tpu.matmul %11, %12, %cst_8 {dimension_numbers = #tpu.dot_dimension_numbers<[1], [0], [0], [1], [0, 0, 1, 1], [], []>} : vector<8x128xbf16>, vector<128x128xbf16>, vector<8x128xf32> -> vector<8x128xf32>
    %14 = vector.broadcast %2 : vector<1x128xf32> to vector<8x128xf32>
    %15 = arith.addf %13, %14 : vector<8x128xf32>
    %16 = math.tanh %15 : vector<8x128xf32>
    %17 = vector.broadcast %3 : vector<1x128xf32> to vector<8x128xf32>
    %18 = arith.mulf %16, %17 : vector<8x128xf32>
    %c0_9 = arith.constant 0 : index
    %c0_10 = arith.constant 0 : index
    %19 = vector.load %arg5[%c0_9, %c0_10] : memref<8x128xf32, #tpu.memory_space<vmem>>, vector<8x128xf32>
    tpu.vector_store %arg5[%c0_9, %c0_10], %18 {strides = array<i32>} : memref<8x128xf32, #tpu.memory_space<vmem>>, vector<8x128xf32>,
    return
  }
  func.func @transform_0(%arg0: i32) -> (i32, i32) {
    %c0_i32 = arith.constant 0 : i32
    %c0_i32_0 = arith.constant 0 : i32
    return %arg0, %c0_i32 : i32, i32
  }
  func.func @transform_1(%arg0: i32) -> (i32, i32) {
    %c0_i32 = arith.constant 0 : i32
    %c0_i32_0 = arith.constant 0 : i32
    %c0_i32_1 = arith.constant 0 : i32
    return %c0_i32, %c0_i32_0 : i32, i32
  }
  func.func @transform_2(%arg0: i32) -> (i32, i32) {
    %c0_i32 = arith.constant 0 : i32
    %c0_i32_0 = arith.constant 0 : i32
    %c0_i32_1 = arith.constant 0 : i32
    return %c0_i32, %c0_i32_0 : i32, i32
  }
  func.func @transform_3(%arg0: i32) -> (i32, i32) {
    %c0_i32 = arith.constant 0 : i32
    %c0_i32_0 = arith.constant 0 : i32
    %c0_i32_1 = arith.constant 0 : i32
    return %c0_i32, %c0_i32_0 : i32, i32
  }
  func.func @transform_4(%arg0: i32) -> (i32, i32) {
    %c0_i32 = arith.constant 0 : i32
    %c0_i32_0 = arith.constant 0 : i32
    return %arg0, %c0_i32 : i32, i32
  }
}

</mosaic_0001>

<bundles_post_ra>
// kernel: tpu_custom_call.1
= control target key start
LH: loop header
LB: loop body
LE: loop exit
PB: predicated region body
PF: predicated region fallthrough
CT: control target
= control target key end

     0   :  { %9 = vsyncpa [#allocation3], 0  ;;  %s486_s0 = inlined_call_operand.hbm [shape: bf16[8,16], index: 0, kind: input, shape index: {}]   ;;  %s487_s1 = inlined_call_operand.hbm [shape: bf16[16,128], index: 1, kind: input, shape index: {}]   ;;  %s488_s2 = inlined_call_operand.hbm [shape: bf16[128,128], index: 2, kind: input, shape index: {}]   ;;  %s489_s3 = inlined_call_operand.hbm [shape: f32[8,128], index: 3, kind: input, shape index: {}]   ;;  %s490_s4 = inlined_call_operand.hbm [shape: f32[8,128], index: 4, kind: output, shape index: {}]  }
   0x1   :  { %10 = vsyncpa [#allocation6], 0 }
   0x2   :  { %11 = vsyncpa [#allocation9], 0 }
   0x3   :  { %12 = vsyncpa [#allocation4], 0  ;;  %s437_s15 = smov [#allocation5]  }
   0x4   :  { %s28_s16 = sshll.u32 %s437_s15, 4  ;;  %s29_s16 = int_to_ptr.vmem [resolvable:$true] %s28_s16 }
   0x5   :  { %s337_s17 = scalar_lea.vmem %s29_s16, 128  ;;  %p342_p1 = scmp.lt.s32.totalorder %s29_s16, %s29_s16 }
   0x6   :  { %p338_p0 = scmp.ne.s32.totalorder %s29_s16, %s337_s17  ;;  %p343_p2 = scmp.lt.s32.totalorder %s337_s17, %s337_s17 }
   0x8   :  { %p344_p3 = por %p343_p2, %p342_p1 }
   0xa   :  { %p345_p4 = pnand %p344_p3, %p338_p0 }
   0xc   :  { %348 = shalt.err (!%p345_p4)
}
   0xd   :  { %s438_s18 = smov 64   ;;  %s439_s19 = smov 4  }
   0xe   :  { %34 = dma.hbm_to_vmem [thread:$0]  %s487_s1, 128, %s29_s16, [#allocation6], %s438_s18, %s438_s18, %s439_s19  }
   0xf   :  { %s440_s22 = smov [#allocation2]   ;;  %s441_s24 = smov [#allocation7]  }
  0x10   :  { %s19_s23 = sshll.u32 %s440_s22, 4  ;;  %s40_s25 = sshll.u32 %s441_s24, 4  ;;  %s20_s23 = int_to_ptr.vmem [resolvable:$true] %s19_s23  ;;  %s41_s25 = int_to_ptr.vmem [resolvable:$true] %s40_s25 }
  0x11   :  { %s357_s26 = scalar_lea.vmem %s20_s23, 64  ;;  %p362_p6 = scmp.lt.s32.totalorder %s20_s23, %s20_s23 }
  0x12   :  { %p358_p5 = scmp.ne.s32.totalorder %s20_s23, %s357_s26  ;;  %p363_p7 = scmp.lt.s32.totalorder %s357_s26, %s357_s26 }
  0x14   :  { %p364_p8 = por %p363_p7, %p362_p6 }
  0x16   :  { %p365_p9 = pnand %p364_p8, %p358_p5 }
  0x18   :  { %368 = shalt.err (!%p365_p9)
}
  0x19   :  { %22 = dma.hbm_to_vmem [thread:$0]  %s486_s0, 64, %s20_s23, [#allocation3]  }
  0x1a   :  { %s377_s29 = scalar_lea.vmem %s41_s25, 1024  ;;  %p382_p11 = scmp.lt.s32.totalorder %s41_s25, %s41_s25 }
  0x1b   :  { %p378_p10 = scmp.ne.s32.totalorder %s41_s25, %s377_s29  ;;  %p383_p12 = scmp.lt.s32.totalorder %s377_s29, %s377_s29 }
  0x1d   :  { %p384_p13 = por %p383_p12, %p382_p11 }
  0x1f   :  { %p385_p0 = pnand %p384_p13, %p378_p10 }
  0x21   :  { %388 = shalt.err (!%p385_p0)
}
  0x22   :  { %46 = dma.hbm_to_vmem [thread:$0]  %s488_s2, 1024, %s41_s25, [#allocation6], %s438_s18, %s438_s18, %s439_s19  }
  0x23   :  { %s442_s5 = smov [#allocation8]  }
  0x24   :  { %s53_s6 = sshll.u32 %s442_s5, 4  ;;  %s54_s6 = int_to_ptr.vmem [resolvable:$true] %s53_s6 }
  0x25   :  { %s397_s7 = scalar_lea.vmem %s54_s6, 128  ;;  %p402_p2 = scmp.lt.s32.totalorder %s54_s6, %s54_s6 }
  0x26   :  { %p398_p1 = scmp.ne.s32.totalorder %s54_s6, %s397_s7  ;;  %p403_p3 = scmp.lt.s32.totalorder %s397_s7, %s397_s7 }
  0x28   :  { %p404_p4 = por %p403_p3, %p402_p2 }
  0x2a   :  { %p405_p5 = pnand %p404_p4, %p398_p1 }
  0x2c   :  { %408 = shalt.err (!%p405_p5)
}
  0x2d   :  { %56 = dma.hbm_to_vmem [thread:$0]  %s489_s3, 128, %s54_s6, [#allocation9]  }
  0x2e   :  { %429 = dma.done.wait [#allocation3], 64  }
  0x2f   :  { %430 = vsyncadd [#allocation3], 4294967232 }
  0x30   :  { %431 = dma.done.wait [#allocation6], 1152  }
  0x31   :  { %432 = vsyncadd [#allocation6], 4294966144 }
  0x32   :  { %433 = dma.done.wait [#allocation9], 128  }
  0x33   :  { %434 = vsyncadd [#allocation9], 4294967168  ;;  %v443_v0 = vmov 0.0   ;;  %vm444_vm0 = vmmov 0   ;;  %v318_v1 = vld [vmem:[#allocation5] sm:$0xff]   ;;  %vm84_vm1 = vcmask 130048   ;;  %v74_v11 = vlaneseq }
  0x34   :  { %283 = vmatprep.subr.bf16.mxu0 %v443_v0  ;;  %285 = vmatprep.mubr.msk.bf16.mxu0 %vm444_vm0, %v443_v0  ;;  %v71_v2 = vld [vmem:[#allocation2] sm:$0xf]  ;;  %v319_v3 = vld [vmem:[#allocation7 + $0x38] sm:$0xff]   ;;  %v321_v5 = vld [vmem:[#allocation7 + $0x28] sm:$0xff]   ;;  %s445_s2 = smov [#allocation10]  }
  0x35   :  { %289 = vmatprep.subr.bf16.mxu1 %v443_v0  ;;  %305 = vmatprep.mubr.msk.bf16.mxu1 %vm444_vm0, %v443_v0  ;;  %v320_v4 = vld [vmem:[#allocation7 + $0x30] sm:$0xff]   ;;  %v322_v6 = vld [vmem:[#allocation7 + $0x20] sm:$0xff]   ;;  %v323_v7 = vld [vmem:[#allocation7 + $0x18] sm:$0xff]   ;;  %v75_v12 = vshrl.u32 %v74_v11, 7  ;;  %s251_s3 = sshll.u32 %s445_s2, 4  ;;  %s252_s3 = int_to_ptr.vmem [resolvable:$true] %s251_s3 }
  0x36   :  { %284 = vmatpush3.bf16.msra.mxu0 %v318_v1  ;;  %290 = vmatpush3.bf16.msra.mxu1 %v319_v3  ;;  %v324_v8 = vld [vmem:[#allocation7 + $0x10] sm:$0xff]   ;;  %v325_v9 = vld [vmem:[#allocation7 + $0x8] sm:$0xff]   ;;  %v326_v10 = vld [vmem:[#allocation7] sm:$0xff]   ;;  %s409_s9 = scalar_lea.vmem %s252_s3, 128  ;;  %p414_p7 = scmp.lt.s32.totalorder %s252_s3, %s252_s3 }
  0x37   :  { %291 = vmatprep.subr.bf16.mxu1 %v443_v0  ;;  %v76_v13 = vsub.s32 0, %v75_v12  ;;  %v70_v14 = vld [vmem:[#allocation8] sm:$0xff]  ;;  %v148_v23 = vsub.s32 1, %v75_v12  ;;  %v241_v30 = vsub.s32 2, %v75_v12  ;;  %p410_p6 = scmp.ne.s32.totalorder %s252_s3, %s409_s9  ;;  %p415_p8 = scmp.lt.s32.totalorder %s409_s9, %s409_s9 }
  0x39   :  { %286 = vmatmul.mubr.msk.bf16.vlgmr.msra.gmra.mxu0 %vm84_vm1, %v71_v2  ;;  %v77_v15 = vrot.slane %v70_v14, %v76_v13  ;;  %v149_v24 = vrot.slane %v70_v14, %v148_v23  ;;  %v242_v31 = vrot.slane %v70_v14, %v241_v30  ;;  %p416_p9 = por %p415_p8, %p414_p7 }
  0x3a   :  { %292 = vmatpush3.bf16.msra.mxu1 %v320_v4 }
  0x3b   :  { %293 = vmatprep.subr.bf16.mxu1 %v443_v0  ;;  %p417_p10 = pnand %p416_p9, %p410_p6 }
  0x3e   :  { %294 = vmatpush3.bf16.msra.mxu1 %v321_v5 }
  0x3f   :  { %295 = vmatprep.subr.bf16.mxu1 %v443_v0 }
  0x42   :  { %296 = vmatpush3.bf16.msra.mxu1 %v322_v6 }
  0x43   :  { %297 = vmatprep.subr.bf16.mxu1 %v443_v0 }
  0x46   :  { %298 = vmatpush3.bf16.msra.mxu1 %v323_v7 }
  0x47   :  { %299 = vmatprep.subr.bf16.mxu1 %v443_v0 }
  0x4a   :  { %300 = vmatpush3.bf16.msra.mxu1 %v324_v8 }
  0x4b   :  { %301 = vmatprep.subr.bf16.mxu1 %v443_v0 }
  0x4e   :  { %302 = vmatpush3.bf16.msra.mxu1 %v325_v9 }
  0x4f   :  { %303 = vmatprep.subr.bf16.mxu1 %v443_v0 }
  0x52   :  { %304 = vmatpush3.bf16.msra.mxu1 %v326_v10 }
  0xf9   :  { %v122_v16 = vpop.f32.mrf.mxu0 }
  0xfa   :  { %v123_v17 = vadd.f32 %v122_v16, %v77_v15 }
  0xfb   :  { %v287_v18 = vpop.f32.mrf.mxu0 }
  0xfc   :  { %v128_v19 = vmax.f32 %v123_v17, 0.0 }
  0xfd   :  { %v125_v20 = vpop.f32.mrf.mxu0 }
  0xfe   :  { %v129_v21 = vpack.c.bf16 %v128_v19, %v128_v19 }
  0xff   :  { %v288_v22 = vpop.f32.mrf.mxu0 }
 0x100   :  { %306 = vmatmul.mubr.bf16.vlgmr.msra.gmra.mxu1 %v129_v21 }
 0x1c0   :  { %v232_v25 = vpop.f32.mrf.mxu1 }
 0x1c1   :  { %v233_v26 = vadd.f32 %v232_v25, %v149_v24 }
 0x1c2   :  { %v307_v27 = vpop.f32.mrf.mxu1 }
 0x1c3   :  { %327 = vtanh.f32 %v233_v26 }
 0x1c4   :  { %v235_v28 = vpop.f32.mrf.mxu1 }
 0x1c6   :  { %v308_v29 = vpop.f32.mrf.mxu1 }
 0x1d0   :  { %v328_v32 = vpop.eup %327 }
 0x1d1   :  { %v243_v33 = vmul.f32 %v328_v32, %v242_v31 }
 0x1d3   :  { %244 = vst [vmem:[#allocation10] sm:$0xff] %v243_v33 }
 0x1d4   :  { %420 = shalt.err (!%p417_p10)
}
 0x1d5   :  { %254 = dma.vmem_to_hbm [thread:$0]  %s252_s3, 128, %s490_s4, [#allocation4]  }
 0x1d6   :  { %435 = dma.done.wait [#allocation4], 128  }
 0x1d7   :  { %436 = vsyncadd [#allocation4], 4294967168 }
 0x1d8   :  { %258 = vsyncpa [#allocation3], 1 }
 0x1d9   :  { %259 = vsyncpa [#allocation6], 1 }
 0x1da   :  { %260 = vsyncpa [#allocation9], 1 }
 0x1db   :  { %261 = vsyncpa [#allocation4], 1 }

</bundles_post_ra>
